<compile_context>
chip_gen: v6e
topology: v6e:2x2x1
jax: 0.10.0
libtpu: 0.0.40
codegen_flags: <defaults>
</compile_context>

<pallas_src>
import functools
import math

import jax
import jax.numpy as jnp
from jax.experimental import pallas as pl
from jax.experimental.pallas import tpu as pltpu

BN_EPS = 1e-5
_LANE = 128


def _conv_bn_swish_kernel(x_ref, wt_ref, shift_ref, o_ref, *, kh_total, img_chunk):
    """One grid step: B images x one lane-tile of the flattened (wo, co) axis.

    x_ref:     (B, H, W*Cin)        activations, (w, ci) flattened on the lane axis
    wt_ref:    (KH*W*Cin, tile_L)   width-Toeplitz weight, KH folded into K, BN scale folded
    shift_ref: (1, tile_L)          folded BN shift (f32)
    o_ref:     (B, H, tile_L)       rows >= Hout are don't-care (sliced off in the wrapper)
    """
    n_img, h_in, wc = x_ref.shape
    tile_l = o_ref.shape[-1]
    w = wt_ref[...]
    shift = shift_ref[...]

    # Static chunk loop over whole images keeps the f32 accumulator <= ~256 rows.
    for b0 in range(0, n_img, img_chunk):
        bc = min(img_chunk, n_img - b0)
        rows = bc * h_in
        lhs = x_ref[b0:b0 + bc].reshape(rows, wc)      # image-aligned (multiple-of-H) slice
        # Fold KH into the contraction dim: lhs_k[r, kh*WC + j] = lhs[(r + kh) % rows, j].
        # The wrap only pollutes rows >= Hout of the last image in the chunk, which are
        # discarded; pltpu.roll runs on the XLU, so no unaligned sublane MXU feeds.
        if kh_total > 1:
            parts = [lhs] + [pltpu.roll(lhs, rows - kh, axis=0)
                             for kh in range(1, kh_total)]
            lhs_k = jnp.concatenate(parts, axis=1)     # (rows, KH*WC)
        else:
            lhs_k = lhs
        acc = jnp.dot(lhs_k, w, preferred_element_type=jnp.float32)
        y = acc + shift
        # Swish = y * sigmoid(y) = y * (0.5 + 0.5*tanh(0.5*y)): a single EUP push per
        # element; the extra mul/adds ride the 4-wide VALU which has slack.
        y = y * (0.5 * jnp.tanh(0.5 * y) + 0.5)
        o_ref[b0:b0 + bc] = y.reshape(bc, h_in, tile_l).astype(o_ref.dtype)


def prepare_ico_conv_params(weight_oihw, gamma, beta, running_mean, running_var,
                            *, in_width, matmul_dtype=None):
    """Fold BN (eval, running stats) into the conv weight and build the width-Toeplitz
    matmul operand ONCE at parameter-load time (hoisted out of the per-forward path)."""
    Cout, Cin, KH, KW = weight_oihw.shape
    W = in_width
    Wout = W - KW + 1
    if matmul_dtype is None:
        # Production: jnp.bfloat16 on v5e/v6e/v7x (bf16-native MXUs, f32 epilogue).
        matmul_dtype = weight_oihw.dtype

    inv_std = jax.lax.rsqrt(running_var.astype(jnp.float32) + BN_EPS)
    scale = gamma.astype(jnp.float32) * inv_std                               # (Cout,)
    shift = beta.astype(jnp.float32) - running_mean.astype(jnp.float32) * scale
    w_folded = weight_oihw.astype(jnp.float32) * scale[:, None, None, None]   # OIHW

    # Lane-dense output geometry: pad Wout so (Wout_pad * Cout) % 128 == 0.
    step = _LANE // math.gcd(Cout, _LANE)
    Wout_pad = ((Wout + step - 1) // step) * step
    L = Wout_pad * Cout

    # Width-Toeplitz with KH folded into the contraction dim:
    #   wt[kh*W*Cin + w*Cin + ci, wo*Cout + co] = w_folded[co, ci, kh, w - wo]
    #     if 0 <= w - wo < KW and wo < Wout, else 0.
    w_k = jnp.transpose(w_folded, (2, 3, 1, 0))                  # (KH, KW, Cin, Cout)
    wp = jnp.arange(W)[:, None]                                  # w'
    wo = jnp.arange(Wout_pad)[None, :]                           # wo
    kw_idx = wp - wo
    valid = (kw_idx >= 0) & (kw_idx < KW) & (wo < Wout)
    kw_idx = jnp.clip(kw_idx, 0, KW - 1)
    t = w_k[:, kw_idx, :, :]                                     # (KH, W, Wout_pad, Cin, Cout)
    t = jnp.where(valid[None, :, :, None, None], t, 0.0)
    wt = jnp.transpose(t, (0, 1, 3, 2, 4)).reshape(KH * W * Cin, L).astype(matmul_dtype)

    # Folded BN shift laid out on the padded (wo, co) lane axis (0 on padded columns).
    shift_lane = jnp.where((jnp.arange(Wout_pad) < Wout)[:, None],
                           shift[None, :], 0.0).reshape(1, L).astype(jnp.float32)

    meta = dict(Cin=Cin, Cout=Cout, KH=KH, KW=KW, W=W, Wout=Wout,
                Wout_pad=Wout_pad, L=L, matmul_dtype=matmul_dtype)
    return jax.device_put(wt), jax.device_put(shift_lane), meta


def ico_conv_module_forward(x_nchw, prepared):
    """IcoConvModule forward, default cfg (conv -> norm -> act, stride=1, padding=0)."""
    wt, shift_lane, meta = prepared
    N, Cin, H, W = x_nchw.shape
    assert Cin == meta["Cin"] and W == meta["W"]
    KH, L = meta["KH"], meta["L"]
    Wout, Wout_pad, Cout = meta["Wout"], meta["Wout_pad"], meta["Cout"]
    mdt = meta["matmul_dtype"]
    Hout = H - KH + 1
    WC = W * Cin
    KHWC = KH * WC
    # TODO(synk): IcoPad (icosahedral padding) with padding>0 has no reference impl here;
    #             the module default padding=0 makes the explicit padding a no-op.

    # NCHW -> (N, H, W*Cin); each activation element read from HBM exactly once.
    # TODO(synk): an NHWC module boundary would drop this transpose and the final one.
    x3d = jnp.transpose(x_nchw, (0, 2, 3, 1)).reshape(N, H, WC).astype(mdt)

    in_bytes = jnp.dtype(mdt).itemsize
    out_bytes = jnp.dtype(x_nchw.dtype).itemsize

    # L-tiling (matters once the Toeplitz weight outgrows the v7x 64 MiB VMEM budget):
    # largest 128-multiple divisor of L keeping the resident wt block <= ~16 MiB.
    tile_L = _LANE
    d = _LANE
    while d <= L:
        if L % d == 0 and KHWC * d * in_bytes <= (16 << 20):
            tile_L = d
        d += _LANE
    n_l = L // tile_L

    # Images per grid step: amortize the ~0.35 us/step overhead (target ~1 MiB x block),
    # keep B*H rows modest, and require B | N.  (On v7x, also prefer keeping N//B even.)
    per_img = H * WC * in_bytes
    target = max(1, min((1 << 20) // max(per_img, 1), max(1, 1024 // H)))
    B = 1
    for cand in range(1, N + 1):
        if N % cand == 0 and cand <= target:
            B = cand
    n_n = N // B
    img_chunk = max(1, min(B, max(1, 256 // H)))   # <= ~256-row f32 accumulator chunks

    # Explicit VMEM budget (v5e's default scoped limit is only 16 MiB of 128 MiB).
    wt_bufs = 1 if n_l == 1 else 2
    need = (2 * B * H * WC * in_bytes
            + wt_bufs * (KHWC * tile_L * in_bytes + tile_L * 4)
            + 2 * B * H * tile_L * out_bytes
            + img_chunk * H * (KHWC * in_bytes + tile_L * 4))
    vmem_limit = int(min(max(2 * need, 32 << 20), 60 << 20))

    cost = pl.CostEstimate(
        flops=int(2 * N * H * KHWC * L),
        transcendentals=int(N * H * L),
        bytes_accessed=int(x3d.size * in_bytes + wt.size * in_bytes
                           + shift_lane.size * 4 + N * H * L * out_bytes),
    )

    def build_call(single_buffer_consts):
        def const_spec(shape, index_map):
            # Constant-index blocks: single-buffer them (pure VMEM savings).
            if single_buffer_consts and n_l == 1:
                return pl.BlockSpec(shape, index_map, pipeline_mode=pl.Buffered(1))
            return pl.BlockSpec(shape, index_map)

        return pl.pallas_call(
            functools.partial(_conv_bn_swish_kernel, kh_total=KH, img_chunk=img_chunk),
            out_shape=jax.ShapeDtypeStruct((N, H, L), x_nchw.dtype),
            grid=(n_n, n_l),
            in_specs=[
                pl.BlockSpec((B, H, WC), lambda n, l: (n, 0, 0)),
                const_spec((KHWC, tile_L), lambda n, l: (0, l)),
                const_spec((1, tile_L), lambda n, l: (0, l)),
            ],
            out_specs=pl.BlockSpec((B, H, tile_L), lambda n, l: (n, 0, l)),
            compiler_params=pltpu.CompilerParams(
                dimension_semantics=("parallel", "parallel"),
                vmem_limit_bytes=vmem_limit),
            cost_estimate=cost,
        )

    try:
        out_flat = build_call(True)(x3d, wt, shift_lane)
    except Exception:
        # pipeline_mode / pl.Buffered(1) unsupported on this jax -> default buffering.
        out_flat = build_call(False)(x3d, wt, shift_lane)

    # Rows >= Hout and columns >= Wout are padding; dropout(droprate=0.0) == identity.
    out = out_flat[:, :Hout].reshape(N, Hout, Wout_pad, Cout)[:, :, :Wout, :]
    return jnp.transpose(out, (0, 3, 1, 2))


def _reference(x_nchw, weight_oihw, gamma, beta, running_mean, running_var):
    y = jax.lax.conv_general_dilated(
        x_nchw, weight_oihw, window_strides=(1, 1), padding="VALID",
        dimension_numbers=("NCHW", "OIHW", "NCHW"))
    inv_std = jax.lax.rsqrt(running_var + BN_EPS)
    scale = (gamma * inv_std).reshape(1, -1, 1, 1)
    shift = (beta - running_mean * gamma * inv_std).reshape(1, -1, 1, 1)
    y = y * scale + shift
    return y * jax.nn.sigmoid(y)


if __name__ == "__main__":
    key = jax.random.PRNGKey(0)
    k_x, k_w = jax.random.split(key)

    # small shapes consistent with the module: N=2, Cin=4, Cout=8, H=W=16, kernel=3
    N, Cin, Cout, H, W, Kk = 2, 4, 8, 16, 16, 3
    x = jax.random.normal(k_x, (N, Cin, H, W), jnp.float32)

    # deterministic params mimicking module __init__:
    #   conv weight ~ kaiming (relu gain), no conv bias (bias='auto' with norm -> False)
    fan_in = Cin * Kk * Kk
    weight = jax.random.normal(k_w, (Cout, Cin, Kk, Kk), jnp.float32) * (2.0 / fan_in) ** 0.5
    #   constant_init(norm, 1, bias=0); fresh running stats
    gamma = jnp.ones((Cout,), jnp.float32)
    beta = jnp.zeros((Cout,), jnp.float32)
    running_mean = jnp.zeros((Cout,), jnp.float32)
    running_var = jnp.ones((Cout,), jnp.float32)

    prepared = prepare_ico_conv_params(weight, gamma, beta, running_mean, running_var,
                                       in_width=W)
    out = jax.block_until_ready(ico_conv_module_forward(x, prepared))

    ref = _reference(x, weight, gamma, beta, running_mean, running_var)
    assert out.shape == (N, Cout, H - Kk + 1, W - Kk + 1), out.shape
    max_err = float(jnp.max(jnp.abs(out - ref)))
    assert jnp.allclose(out, ref, atol=1e-3, rtol=1e-3), max_err

    print("KERNEL_OK")
</pallas_src>

<mosaic_0001>
module attributes {stable_mosaic.version = 11 : i64} {
  func.func @_conv_bn_swish_kernel(%arg0: i32, %arg1: i32, %arg2: memref<2x16x64xf32, #tpu.memory_space<vmem>>, %arg3: memref<192x128xf32, #tpu.memory_space<vmem>>, %arg4: memref<1x128xf32, #tpu.memory_space<vmem>>, %arg5: memref<2x16x128xf32, #tpu.memory_space<vmem>>) attributes {dimension_semantics = [#tpu.dimension_semantics<parallel>, #tpu.dimension_semantics<parallel>], iteration_bounds = array<i64: 1, 1>, scalar_prefetch = 0 : i64, scratch_operands = 0 : i64, tpu.core_type = #tpu.core_type<tc>, window_params = [{transform_indices = @transform_0, window_bounds = array<i64: 2, 16, 64>}, {pipeline_mode = #tpu.pipeline_mode<synchronous>, transform_indices = @transform_1, window_bounds = array<i64: 192, 128>}, {pipeline_mode = #tpu.pipeline_mode<synchronous>, transform_indices = @transform_2, window_bounds = array<i64: 1, 128>}, {transform_indices = @transform_3, window_bounds = array<i64: 2, 16, 128>}]} {
    %c0 = arith.constant 0 : index
    %c0_0 = arith.constant 0 : index
    %0 = vector.load %arg3[%c0, %c0_0] : memref<192x128xf32, #tpu.memory_space<vmem>>, vector<192x128xf32>
    %c0_1 = arith.constant 0 : index
    %c0_2 = arith.constant 0 : index
    %1 = vector.load %arg4[%c0_1, %c0_2] : memref<1x128xf32, #tpu.memory_space<vmem>>, vector<1x128xf32>
    %c0_3 = arith.constant 0 : index
    %c0_4 = arith.constant 0 : index
    %c0_5 = arith.constant 0 : index
    %2 = vector.load %arg2[%c0_3, %c0_4, %c0_5] : memref<2x16x64xf32, #tpu.memory_space<vmem>>, vector<2x16x64xf32>
    %3 = vector.shape_cast %2 : vector<2x16x64xf32> to vector<32x64xf32>
    %c31_i32 = arith.constant 31 : i32
    %4 = tpu.dynamic_rotate %3 by %c31_i32 dim 0 : vector<32x64xf32>, i32 -> vector<32x64xf32>
    %c30_i32 = arith.constant 30 : i32
    %5 = tpu.dynamic_rotate %3 by %c30_i32 dim 0 : vector<32x64xf32>, i32 -> vector<32x64xf32>
    %6 = tpu.concatenate %3, %4, %5 in 1 : vector<32x64xf32>, vector<32x64xf32>, vector<32x64xf32> -> vector<32x192xf32>
    %cst = arith.constant dense<0.000000e+00> : vector<32x128xf32>
    %7 = tpu.matmul %6, %0, %cst {dimension_numbers = #tpu.dot_dimension_numbers<[1], [0], [0], [1], [0, 0, 1, 1], [], []>} : vector<32x192xf32>, vector<192x128xf32>, vector<32x128xf32> -> vector<32x128xf32>
    %8 = vector.broadcast %1 : vector<1x128xf32> to vector<32x128xf32>
    %9 = arith.addf %7, %8 : vector<32x128xf32>
    %cst_6 = arith.constant 5.000000e-01 : f32
    %10 = vector.broadcast %cst_6 : f32 to vector<32x128xf32>
    %11 = arith.mulf %10, %9 : vector<32x128xf32>
    %12 = math.tanh %11 : vector<32x128xf32>
    %cst_7 = arith.constant 5.000000e-01 : f32
    %13 = vector.broadcast %cst_7 : f32 to vector<32x128xf32>
    %14 = arith.mulf %13, %12 : vector<32x128xf32>
    %cst_8 = arith.constant 5.000000e-01 : f32
    %15 = vector.broadcast %cst_8 : f32 to vector<32x128xf32>
    %16 = arith.addf %14, %15 : vector<32x128xf32>
    %17 = arith.mulf %9, %16 : vector<32x128xf32>
    %18 = vector.shape_cast %17 : vector<32x128xf32> to vector<2x16x128xf32>
    %c0_9 = arith.constant 0 : index
    %c0_10 = arith.constant 0 : index
    %c0_11 = arith.constant 0 : index
    %19 = vector.load %arg5[%c0_9, %c0_10, %c0_11] : memref<2x16x128xf32, #tpu.memory_space<vmem>>, vector<2x16x128xf32>
    tpu.vector_store %arg5[%c0_9, %c0_10, %c0_11], %18 {strides = array<i32>} : memref<2x16x128xf32, #tpu.memory_space<vmem>>, vector<2x16x128xf32>,
    return
  }
  func.func @transform_0(%arg0: i32, %arg1: i32) -> (i32, i32, i32) {
    %c0_i32 = arith.constant 0 : i32
    %c0_i32_0 = arith.constant 0 : i32
    %c0_i32_1 = arith.constant 0 : i32
    return %arg0, %c0_i32, %c0_i32_0 : i32, i32, i32
  }
  func.func @transform_1(%arg0: i32, %arg1: i32) -> (i32, i32) {
    %c0_i32 = arith.constant 0 : i32
    %c0_i32_0 = arith.constant 0 : i32
    return %c0_i32, %arg1 : i32, i32
  }
  func.func @transform_2(%arg0: i32, %arg1: i32) -> (i32, i32) {
    %c0_i32 = arith.constant 0 : i32
    %c0_i32_0 = arith.constant 0 : i32
    return %c0_i32, %arg1 : i32, i32
  }
  func.func @transform_3(%arg0: i32, %arg1: i32) -> (i32, i32, i32) {
    %c0_i32 = arith.constant 0 : i32
    %c0_i32_0 = arith.constant 0 : i32
    return %arg0, %c0_i32, %arg1 : i32, i32, i32
  }
}

module attributes {stable_mosaic.version = 11 : i64} {
  func.func @_conv_bn_swish_kernel(%arg0: i32, %arg1: i32, %arg2: memref<2x16x64xf32, #tpu.memory_space<vmem>>, %arg3: memref<192x128xf32, #tpu.memory_space<vmem>>, %arg4: memref<1x128xf32, #tpu.memory_space<vmem>>, %arg5: memref<2x16x128xf32, #tpu.memory_space<vmem>>) attributes {dimension_semantics = [#tpu.dimension_semantics<parallel>, #tpu.dimension_semantics<parallel>], iteration_bounds = array<i64: 1, 1>, scalar_prefetch = 0 : i64, scratch_operands = 0 : i64, tpu.core_type = #tpu.core_type<tc>, window_params = [{transform_indices = @transform_0, window_bounds = array<i64: 2, 16, 64>}, {transform_indices = @transform_1, window_bounds = array<i64: 192, 128>}, {transform_indices = @transform_2, window_bounds = array<i64: 1, 128>}, {transform_indices = @transform_3, window_bounds = array<i64: 2, 16, 128>}]} {
    %c0 = arith.constant 0 : index
    %c0_0 = arith.constant 0 : index
    %0 = vector.load %arg3[%c0, %c0_0] : memref<192x128xf32, #tpu.memory_space<vmem>>, vector<192x128xf32>
    %c0_1 = arith.constant 0 : index
    %c0_2 = arith.constant 0 : index
    %1 = vector.load %arg4[%c0_1, %c0_2] : memref<1x128xf32, #tpu.memory_space<vmem>>, vector<1x128xf32>
    %c0_3 = arith.constant 0 : index
    %c0_4 = arith.constant 0 : index
    %c0_5 = arith.constant 0 : index
    %2 = vector.load %arg2[%c0_3, %c0_4, %c0_5] : memref<2x16x64xf32, #tpu.memory_space<vmem>>, vector<2x16x64xf32>
    %3 = vector.shape_cast %2 : vector<2x16x64xf32> to vector<32x64xf32>
    %c31_i32 = arith.constant 31 : i32
    %4 = tpu.dynamic_rotate %3 by %c31_i32 dim 0 : vector<32x64xf32>, i32 -> vector<32x64xf32>
    %c30_i32 = arith.constant 30 : i32
    %5 = tpu.dynamic_rotate %3 by %c30_i32 dim 0 : vector<32x64xf32>, i32 -> vector<32x64xf32>
    %6 = tpu.concatenate %3, %4, %5 in 1 : vector<32x64xf32>, vector<32x64xf32>, vector<32x64xf32> -> vector<32x192xf32>
    %cst = arith.constant dense<0.000000e+00> : vector<32x128xf32>
    %7 = tpu.matmul %6, %0, %cst {dimension_numbers = #tpu.dot_dimension_numbers<[1], [0], [0], [1], [0, 0, 1, 1], [], []>} : vector<32x192xf32>, vector<192x128xf32>, vector<32x128xf32> -> vector<32x128xf32>
    %8 = vector.broadcast %1 : vector<1x128xf32> to vector<32x128xf32>
    %9 = arith.addf %7, %8 : vector<32x128xf32>
    %cst_6 = arith.constant 5.000000e-01 : f32
    %10 = vector.broadcast %cst_6 : f32 to vector<32x128xf32>
    %11 = arith.mulf %10, %9 : vector<32x128xf32>
    %12 = math.tanh %11 : vector<32x128xf32>
    %cst_7 = arith.constant 5.000000e-01 : f32
    %13 = vector.broadcast %cst_7 : f32 to vector<32x128xf32>
    %14 = arith.mulf %13, %12 : vector<32x128xf32>
    %cst_8 = arith.constant 5.000000e-01 : f32
    %15 = vector.broadcast %cst_8 : f32 to vector<32x128xf32>
    %16 = arith.addf %14, %15 : vector<32x128xf32>
    %17 = arith.mulf %9, %16 : vector<32x128xf32>
    %18 = vector.shape_cast %17 : vector<32x128xf32> to vector<2x16x128xf32>
    %c0_9 = arith.constant 0 : index
    %c0_10 = arith.constant 0 : index
    %c0_11 = arith.constant 0 : index
    %19 = vector.load %arg5[%c0_9, %c0_10, %c0_11] : memref<2x16x128xf32, #tpu.memory_space<vmem>>, vector<2x16x128xf32>
    tpu.vector_store %arg5[%c0_9, %c0_10, %c0_11], %18 {strides = array<i32>} : memref<2x16x128xf32, #tpu.memory_space<vmem>>, vector<2x16x128xf32>,
    return
  }
  func.func @transform_0(%arg0: i32, %arg1: i32) -> (i32, i32, i32) {
    %c0_i32 = arith.constant 0 : i32
    %c0_i32_0 = arith.constant 0 : i32
    %c0_i32_1 = arith.constant 0 : i32
    return %arg0, %c0_i32, %c0_i32_0 : i32, i32, i32
  }
  func.func @transform_1(%arg0: i32, %arg1: i32) -> (i32, i32) {
    %c0_i32 = arith.constant 0 : i32
    %c0_i32_0 = arith.constant 0 : i32
    return %c0_i32, %arg1 : i32, i32
  }
  func.func @transform_2(%arg0: i32, %arg1: i32) -> (i32, i32) {
    %c0_i32 = arith.constant 0 : i32
    %c0_i32_0 = arith.constant 0 : i32
    return %c0_i32, %arg1 : i32, i32
  }
  func.func @transform_3(%arg0: i32, %arg1: i32) -> (i32, i32, i32) {
    %c0_i32 = arith.constant 0 : i32
    %c0_i32_0 = arith.constant 0 : i32
    return %arg0, %c0_i32, %arg1 : i32, i32, i32
  }
}

</mosaic_0001>

<bundles_post_ra>
// kernel: tpu_custom_call.1
= control target key start
LH: loop header
LB: loop body
LE: loop exit
PB: predicated region body
PF: predicated region fallthrough
CT: control target
= control target key end

     0   :  { %8 = vsyncpa [#allocation3], 0  ;;  %s568_s0 = inlined_call_operand.hbm [shape: f32[2,16,64], index: 0, kind: input, shape index: {}]   ;;  %s569_s1 = inlined_call_operand.hbm [shape: f32[192,128], index: 1, kind: input, shape index: {}]   ;;  %s570_s2 = inlined_call_operand.vmem [shape: f32[1,128], index: 2, kind: input, shape index: {}]   ;;  %s571_s3 = inlined_call_operand.hbm [shape: f32[2,16,128], index: 3, kind: output, shape index: {}]  }
   0x1   :  { %9 = vsyncpa [#allocation6], 0 }
   0x2   :  { %10 = vsyncpa [#allocation4], 0  ;;  %s402_s12 = smov [#allocation2]  }
   0x3   :  { %s16_s13 = sshll.u32 %s402_s12, 4  ;;  %s17_s13 = int_to_ptr.vmem [resolvable:$true] %s16_s13 }
   0x4   :  { %s344_s14 = scalar_lea.vmem %s17_s13, 512  ;;  %p349_p1 = scmp.lt.s32.totalorder %s17_s13, %s17_s13 }
   0x5   :  { %p345_p0 = scmp.ne.s32.totalorder %s17_s13, %s344_s14  ;;  %p350_p2 = scmp.lt.s32.totalorder %s344_s14, %s344_s14 }
   0x7   :  { %p351_p3 = por %p350_p2, %p349_p1 }
   0x9   :  { %p352_p4 = pnand %p351_p3, %p345_p0 }
   0xb   :  { %355 = shalt.err (!%p352_p4)
}
   0xc   :  { %s403_s15 = smov 128   ;;  %s404_s16 = smov 8  }
   0xd   :  { %22 = dma.hbm_to_vmem [thread:$0]  %s568_s0, 512, %s17_s13, [#allocation3], %s403_s15, %s403_s15, %s404_s16  }
   0xe   :  { %s405_s19 = smov [#allocation5]  }
   0xf   :  { %s28_s20 = sshll.u32 %s405_s19, 4  ;;  %s29_s20 = int_to_ptr.vmem [resolvable:$true] %s28_s20 }
  0x10   :  { %s364_s21 = scalar_lea.vmem %s29_s20, 3072  ;;  %p369_p6 = scmp.lt.s32.totalorder %s29_s20, %s29_s20 }
  0x11   :  { %p365_p5 = scmp.ne.s32.totalorder %s29_s20, %s364_s21  ;;  %p370_p7 = scmp.lt.s32.totalorder %s364_s21, %s364_s21 }
  0x13   :  { %p371_p8 = por %p370_p7, %p369_p6 }
  0x15   :  { %p372_p9 = pnand %p371_p8, %p365_p5 }
  0x17   :  { %375 = shalt.err (!%p372_p9)
}
  0x18   :  { %34 = dma.hbm_to_vmem [thread:$0]  %s569_s1, 3072, %s29_s20, [#allocation6], %s403_s15, %s403_s15, %s404_s16  }
  0x19   :  { %396 = dma.done.wait [#allocation3], 512  }
  0x1a   :  { %397 = vsyncadd [#allocation3], 4294966784 }
  0x1b   :  { %398 = dma.done.wait [#allocation6], 3072  }
  0x1c   :  { %399 = vsyncadd [#allocation6], 4294964224  ;;  %v76_v0 = vlaneseq  ;;  %v406_v1 = vmov 0.0   ;;  %v445_v3 = vld [vmem:[#allocation2] sm:$0xff]  ;;  %v447_v4 = vld [vmem:[#allocation2 + $0x8] sm:$0xff]  ;;  %s407_s0 = smov 64  }
  0x1d   :  { %131 = vmatprep.subr.mxu0 %v406_v1  ;;  %263 = vmatprep.subr.mxu1 %v406_v1  ;;  %v449_v5 = vld [vmem:[#allocation2 + $0x10] sm:$0xff]  ;;  %v452_v6 = vld [vmem:[#allocation2 + $0x18] sm:$0xff]  ;;  %v72_v7 = vrot.slane %v445_v3, 1  ;;  %v73_v8 = vrot.slane %v447_v4, 1  ;;  %v56_v15 = vld [vmem:[#allocation5 + $0x68] sm:$0xff]  ;;  %v83_v16 = vrot.slane %v445_v3, 2 }
  0x1e   :  { %v443_v2 = vshrl.u32 %v76_v0, 7  ;;  %v74_v9 = vrot.slane %v449_v5, 1  ;;  %v58_v10 = vld [vmem:[#allocation5 + $0x78] sm:$0xff]  ;;  %v57_v11 = vld [vmem:[#allocation5 + $0x70] sm:$0xff]  ;;  %v75_v12 = vrot.slane %v452_v6, 1  ;;  %v84_v17 = vrot.slane %v447_v4, 2 }
  0x1f   :  { %132 = vmatpush1.msra.mxu0 %v58_v10  ;;  %287 = vmatpush1.msra.mxu1 %v58_v10  ;;  %v85_v20 = vrot.slane %v449_v5, 2  ;;  %v86_v21 = vrot.slane %v452_v6, 2  ;;  %v55_v23 = vld [vmem:[#allocation5 + $0x60] sm:$0xff]  ;;  %v54_v27 = vld [vmem:[#allocation5 + $0x58] sm:$0xff]  ;;  %v53_v28 = vld [vmem:[#allocation5 + $0x50] sm:$0xff]  ;;  %vm108_vm2 = vcmask 523264  }
  0x20   :  { %vm78_vm0 = vcmp.lt.s32.totalorder %v443_v2, 7  ;;  %133 = vmatprep.subr.mxu0 %v406_v1  ;;  %264 = vmatprep.subr.mxu1 %v406_v1  ;;  %vm87_vm1 = vcmp.lt.s32.totalorder %v443_v2, 6  ;;  %v52_v29 = vld [vmem:[#allocation5 + $0x48] sm:$0xff]  ;;  %v51_v30 = vld [vmem:[#allocation5 + $0x40] sm:$0xff]  ;;  %v50_v31 = vld [vmem:[#allocation5 + $0x38] sm:$0xff] }
  0x21   :  { %v81_v13 = vsel %vm78_vm0, %v72_v7, %v73_v8  ;;  %v80_v14 = vsel %vm78_vm0, %v73_v8, %v74_v9  ;;  %v79_v18 = vsel %vm78_vm0, %v74_v9, %v75_v12  ;;  %v82_v19 = vsel %vm78_vm0, %v75_v12, %v72_v7  ;;  %134 = vmatpush1.msra.mxu0 %v57_v11  ;;  %v49_v32 = vld [vmem:[#allocation5 + $0x30] sm:$0xff]  ;;  %v48_v33 = vld [vmem:[#allocation5 + $0x28] sm:$0xff]  ;;  %v47_v34 = vld [vmem:[#allocation5 + $0x20] sm:$0xff] }
  0x22   :  { %288 = vmatpush1.msra.mxu1 %v57_v11  ;;  %v318_v22 = vpack.i.bf16 %v79_v18, %v81_v13  ;;  %135 = vmatprep.subr.mxu0 %v406_v1  ;;  %v481_v24 = vsel %vm87_vm1, %v84_v17, %v85_v20  ;;  %v489_v25 = vsel %vm87_vm1, %v86_v21, %v83_v16  ;;  %v46_v35 = vld [vmem:[#allocation5 + $0x18] sm:$0xff]  ;;  %v45_v36 = vld [vmem:[#allocation5 + $0x10] sm:$0xff]  ;;  %v44_v37 = vld [vmem:[#allocation5 + $0x8] sm:$0xff] }
  0x23   :  { %265 = vmatprep.subr.mxu1 %v406_v1  ;;  %136 = vmatpush1.msra.mxu0 %v56_v15  ;;  %v323_v26 = vpack.i.bf16 %v82_v19, %v80_v14  ;;  %v43_v38 = vld [vmem:[#allocation5] sm:$0xff]  ;;  %v66_v39 = vld [vmem:[#allocation5 + $0xb8] sm:$0xff]  ;;  %v65_v40 = vld [vmem:[#allocation5 + $0xb0] sm:$0xff]  ;;  %v90_v47 = vsel %vm87_vm1, %v83_v16, %v84_v17  ;;  %v88_v48 = vsel %vm87_vm1, %v85_v20, %v86_v21 }
  0x24   :  { %289 = vmatpush1.msra.mxu1 %v56_v15  ;;  %319 = vrot.lane.b32.xlu0 %v318_v22, %s407_s0  ;;  %v64_v41 = vld [vmem:[#allocation5 + $0xa8] sm:$0xff]  ;;  %v63_v42 = vld [vmem:[#allocation5 + $0xa0] sm:$0xff]  ;;  %v62_v43 = vld [vmem:[#allocation5 + $0x98] sm:$0xff] }
  0x25   :  { %137 = vmatprep.subr.mxu0 %v406_v1  ;;  %266 = vmatprep.subr.mxu1 %v406_v1  ;;  %v61_v44 = vld [vmem:[#allocation5 + $0x90] sm:$0xff]  ;;  %v60_v45 = vld [vmem:[#allocation5 + $0x88] sm:$0xff]  ;;  %v59_v46 = vld [vmem:[#allocation5 + $0x80] sm:$0xff] }
  0x26   :  { %138 = vmatpush1.msra.mxu0 %v55_v23  ;;  %290 = vmatpush1.msra.mxu1 %v55_v23  ;;  %v258_v59 = vld [vmem:[%s570_s2] ss:$0 sm:$0xff]  ;;  %s408_s2 = smov [#allocation7]  }
  0x27   :  { %139 = vmatprep.subr.mxu0 %v406_v1  ;;  %267 = vmatprep.subr.mxu1 %v406_v1  ;;  %s245_s25 = sshll.u32 %s408_s2, 4  ;;  %s246_s25 = int_to_ptr.vmem [resolvable:$true] %s245_s25 }
  0x28   :  { %140 = vmatpush1.msra.mxu0 %v54_v27  ;;  %324 = vrot.lane.b32.xlu0 %v323_v26, %s407_s0  ;;  %s376_s26 = scalar_lea.vmem %s246_s25, 512  ;;  %p381_p11 = scmp.lt.s32.totalorder %s246_s25, %s246_s25 }
  0x29   :  { %291 = vmatpush1.msra.mxu1 %v54_v27  ;;  %141 = vmatprep.subr.mxu0 %v406_v1  ;;  %p377_p10 = scmp.ne.s32.totalorder %s246_s25, %s376_s26  ;;  %p382_p12 = scmp.lt.s32.totalorder %s376_s26, %s376_s26 }
  0x2a   :  { %268 = vmatprep.subr.mxu1 %v406_v1  ;;  %142 = vmatpush1.msra.mxu0 %v53_v28 }
  0x2b   :  { %292 = vmatpush1.msra.mxu1 %v53_v28  ;;  %143 = vmatprep.subr.mxu0 %v406_v1  ;;  %p383_p13 = por %p382_p12, %p381_p11 }
  0x2c   :  { %269 = vmatprep.subr.mxu1 %v406_v1  ;;  %144 = vmatpush1.msra.mxu0 %v52_v29 }
  0x2d   :  { %293 = vmatpush1.msra.mxu1 %v52_v29  ;;  %145 = vmatprep.subr.mxu0 %v406_v1  ;;  %p384_p0 = pnand %p383_p13, %p377_p10 }
  0x2e   :  { %270 = vmatprep.subr.mxu1 %v406_v1  ;;  %146 = vmatpush1.msra.mxu0 %v51_v30 }
  0x2f   :  { %294 = vmatpush1.msra.mxu1 %v51_v30  ;;  %147 = vmatprep.subr.mxu0 %v406_v1 }
  0x30   :  { %271 = vmatprep.subr.mxu1 %v406_v1  ;;  %148 = vmatpush1.msra.mxu0 %v50_v31 }
  0x31   :  { %295 = vmatpush1.msra.mxu1 %v50_v31  ;;  %149 = vmatprep.subr.mxu0 %v406_v1 }
  0x32   :  { %272 = vmatprep.subr.mxu1 %v406_v1  ;;  %150 = vmatpush1.msra.mxu0 %v49_v32 }
  0x33   :  { %296 = vmatpush1.msra.mxu1 %v49_v32  ;;  %151 = vmatprep.subr.mxu0 %v406_v1 }
  0x34   :  { %273 = vmatprep.subr.mxu1 %v406_v1  ;;  %152 = vmatpush1.msra.mxu0 %v48_v33 }
  0x35   :  { %297 = vmatpush1.msra.mxu1 %v48_v33  ;;  %153 = vmatprep.subr.mxu0 %v406_v1 }
  0x36   :  { %274 = vmatprep.subr.mxu1 %v406_v1  ;;  %154 = vmatpush1.msra.mxu0 %v47_v34 }
  0x37   :  { %298 = vmatpush1.msra.mxu1 %v47_v34  ;;  %155 = vmatprep.subr.mxu0 %v406_v1 }
  0x38   :  { %275 = vmatprep.subr.mxu1 %v406_v1  ;;  %156 = vmatpush1.msra.mxu0 %v46_v35 }
  0x39   :  { %299 = vmatpush1.msra.mxu1 %v46_v35  ;;  %157 = vmatprep.subr.mxu0 %v406_v1 }
  0x3a   :  { %276 = vmatprep.subr.mxu1 %v406_v1  ;;  %158 = vmatpush1.msra.mxu0 %v45_v36 }
  0x3b   :  { %300 = vmatpush1.msra.mxu1 %v45_v36  ;;  %159 = vmatprep.subr.mxu0 %v406_v1 }
  0x3c   :  { %277 = vmatprep.subr.mxu1 %v406_v1  ;;  %160 = vmatpush1.msra.mxu0 %v44_v37 }
  0x3d   :  { %301 = vmatpush1.msra.mxu1 %v44_v37  ;;  %161 = vmatprep.subr.mxu0 %v406_v1 }
  0x3e   :  { %278 = vmatprep.subr.mxu1 %v406_v1  ;;  %162 = vmatpush1.msra.mxu0 %v43_v38 }
  0x3f   :  { %302 = vmatpush1.msra.mxu1 %v43_v38  ;;  %179 = vmatprep.subr.mxu0 %v406_v1 }
  0x40   :  { %279 = vmatprep.subr.mxu1 %v406_v1  ;;  %180 = vmatpush2.msra.mxu0 %v66_v39 }
  0x41   :  { %303 = vmatpush2.msra.mxu1 %v66_v39  ;;  %181 = vmatprep.subr.mxu0 %v406_v1 }
  0x42   :  { %280 = vmatprep.subr.mxu1 %v406_v1  ;;  %182 = vmatpush2.msra.mxu0 %v65_v40 }
  0x43   :  { %304 = vmatpush2.msra.mxu1 %v65_v40  ;;  %183 = vmatprep.subr.mxu0 %v406_v1 }
  0x44   :  { %281 = vmatprep.subr.mxu1 %v406_v1  ;;  %184 = vmatpush2.msra.mxu0 %v64_v41 }
  0x45   :  { %305 = vmatpush2.msra.mxu1 %v64_v41  ;;  %185 = vmatprep.subr.mxu0 %v406_v1 }
  0x46   :  { %282 = vmatprep.subr.mxu1 %v406_v1  ;;  %186 = vmatpush2.msra.mxu0 %v63_v42 }
  0x47   :  { %306 = vmatpush2.msra.mxu1 %v63_v42  ;;  %187 = vmatprep.subr.mxu0 %v406_v1 }
  0x48   :  { %283 = vmatprep.subr.mxu1 %v406_v1  ;;  %188 = vmatpush2.msra.mxu0 %v62_v43 }
  0x49   :  { %307 = vmatpush2.msra.mxu1 %v62_v43  ;;  %189 = vmatprep.subr.mxu0 %v406_v1 }
  0x4a   :  { %284 = vmatprep.subr.mxu1 %v406_v1  ;;  %190 = vmatpush2.msra.mxu0 %v61_v44 }
  0x4b   :  { %308 = vmatpush2.msra.mxu1 %v61_v44  ;;  %191 = vmatprep.subr.mxu0 %v406_v1 }
  0x4c   :  { %285 = vmatprep.subr.mxu1 %v406_v1  ;;  %192 = vmatpush2.msra.mxu0 %v60_v45 }
  0x4d   :  { %309 = vmatpush2.msra.mxu1 %v60_v45  ;;  %193 = vmatprep.subr.mxu0 %v406_v1 }
  0x4e   :  { %286 = vmatprep.subr.mxu1 %v406_v1  ;;  %194 = vmatpush2.msra.mxu0 %v59_v46 }
  0x4f   :  { %310 = vmatpush2.msra.mxu1 %v59_v46  ;;  %259 = vmatprep.mubr.msk.f32.mxu0 %vm108_vm2, %v90_v47 }
  0x50   :  { %261 = vmatprep.mubr.msk.f32.mxu1 %vm108_vm2, %v88_v48 }
  0x96   :  { %v320_v49 = vpop.permute.xlu0 %319 }
  0x97   :  { %v322_v50 = vunpack.i.h.bf16 %v320_v49  ;;  %v321_v51 = vunpack.i.l.bf16 %v320_v49 }
  0x99   :  { %v109_v52 = vsel %vm108_vm2, %v445_v3, %v321_v51  ;;  %v111_v53 = vsel %vm108_vm2, %v449_v5, %v322_v50 }
  0x9a   :  { %v325_v54 = vpop.permute.xlu0 %324  ;;  %196 = vmatmul.mubr.f32.vlgmr.msra.gmra.mxu0 %v109_v52  ;;  %206 = vmatmul.mubr.f32.vlgmr.msra.gmra.mxu1 %v111_v53 }
  0x9b   :  { %v327_v55 = vunpack.i.h.bf16 %v325_v54  ;;  %v326_v56 = vunpack.i.l.bf16 %v325_v54  ;;  %260 = vmatprep.mubr.msk.f32.mxu0 %vm108_vm2, %v481_v24  ;;  %262 = vmatprep.mubr.msk.f32.mxu1 %vm108_vm2, %v489_v25 }
  0x9d   :  { %v110_v57 = vsel %vm108_vm2, %v447_v4, %v326_v56  ;;  %v112_v58 = vsel %vm108_vm2, %v452_v6, %v327_v55 }
  0x9e   :  { %201 = vmatmul.mubr.f32.gmra.mxu0 %v110_v57  ;;  %211 = vmatmul.mubr.f32.gmra.mxu1 %v112_v58 }
 0x15a   :  { %v197_v60 = vpop.f32.mrf.mxu0  ;;  %v207_v61 = vpop.f32.mrf.mxu1 }
 0x15b   :  { %v198_v62 = vadd.f32 %v258_v59, %v197_v60  ;;  %v208_v63 = vadd.f32 %v258_v59, %v207_v61 }
 0x15c   :  { %v199_v0 = vpop.f32.mrf.mxu0  ;;  %v209_v1 = vpop.f32.mrf.mxu1 }
 0x15d   :  { %v216_v2 = vmul.f32 0.5, %v198_v62  ;;  %v218_v3 = vmul.f32 0.5, %v208_v63 }
 0x15e   :  { %v202_v5 = vpop.f32.mrf.mxu0  ;;  %v212_v7 = vpop.f32.mrf.mxu1 }
 0x15f   :  { %328 = vtanh.f32 %v216_v2  ;;  %v203_v4 = vadd.f32 %v258_v59, %v202_v5  ;;  %v213_v8 = vadd.f32 %v258_v59, %v212_v7 }
 0x160   :  { %330 = vtanh.f32 %v218_v3  ;;  %v204_v6 = vpop.f32.mrf.mxu0  ;;  %v214_v9 = vpop.f32.mrf.mxu1 }
 0x161   :  { %v217_v10 = vmul.f32 0.5, %v203_v4  ;;  %v219_v11 = vmul.f32 0.5, %v213_v8 }
 0x163   :  { %332 = vtanh.f32 %v217_v10 }
 0x164   :  { %334 = vtanh.f32 %v219_v11 }
 0x16c   :  { %v329_v12 = vpop.eup %328 }
 0x16d   :  { %v331_v13 = vpop.eup %330  ;;  %v224_v14 = vmul.f32 0.5, %v329_v12 }
 0x16e   :  { %v226_v15 = vmul.f32 0.5, %v331_v13 }
 0x16f   :  { %v228_v16 = vadd.f32 0.5, %v224_v14 }
 0x170   :  { %v333_v17 = vpop.eup %332  ;;  %v230_v18 = vadd.f32 0.5, %v226_v15 }
 0x171   :  { %v335_v19 = vpop.eup %334  ;;  %v232_v20 = vmul.f32 %v228_v16, %v198_v62  ;;  %v225_v21 = vmul.f32 0.5, %v333_v17 }
 0x172   :  { %v234_v22 = vmul.f32 %v230_v18, %v208_v63  ;;  %v227_v23 = vmul.f32 0.5, %v335_v19 }
 0x173   :  { %236 = vst [vmem:[#allocation7] sm:$0xff] %v232_v20  ;;  %v229_v24 = vadd.f32 0.5, %v225_v21 }
 0x174   :  { %238 = vst [vmem:[#allocation7 + $0x10] sm:$0xff] %v234_v22  ;;  %v231_v25 = vadd.f32 0.5, %v227_v23 }
 0x175   :  { %v233_v26 = vmul.f32 %v229_v24, %v203_v4 }
 0x176   :  { %v235_v27 = vmul.f32 %v231_v25, %v213_v8 }
 0x177   :  { %237 = vst [vmem:[#allocation7 + $0x8] sm:$0xff] %v233_v26 }
 0x178   :  { %239 = vst [vmem:[#allocation7 + $0x18] sm:$0xff] %v235_v27 }
 0x179   :  { %387 = shalt.err (!%p384_p0)
}
 0x17a   :  { %251 = dma.vmem_to_hbm [thread:$0]  %s246_s25, 512, %s571_s3, [#allocation4], %s403_s15, %s403_s15, %s404_s16  }
 0x17b   :  { %400 = dma.done.wait [#allocation4], 512  }
 0x17c   :  { %401 = vsyncadd [#allocation4], 4294966784 }
 0x17d   :  { %255 = vsyncpa [#allocation3], 1 }
 0x17e   :  { %256 = vsyncpa [#allocation6], 1 }
 0x17f   :  { %257 = vsyncpa [#allocation4], 1 }

// kernel: tpu_custom_call.1
= control target key start
LH: loop header
LB: loop body
LE: loop exit
PB: predicated region body
PF: predicated region fallthrough
CT: control target
= control target key end

     0   :  { %8 = vsyncpa [#allocation3], 0  ;;  %s568_s0 = inlined_call_operand.hbm [shape: f32[2,16,64], index: 0, kind: input, shape index: {}]   ;;  %s569_s1 = inlined_call_operand.hbm [shape: f32[192,128], index: 1, kind: input, shape index: {}]   ;;  %s570_s2 = inlined_call_operand.vmem [shape: f32[1,128], index: 2, kind: input, shape index: {}]   ;;  %s571_s3 = inlined_call_operand.hbm [shape: f32[2,16,128], index: 3, kind: output, shape index: {}]  }
   0x1   :  { %9 = vsyncpa [#allocation6], 0 }
   0x2   :  { %10 = vsyncpa [#allocation4], 0  ;;  %s402_s12 = smov [#allocation2]  }
   0x3   :  { %s16_s13 = sshll.u32 %s402_s12, 4  ;;  %s17_s13 = int_to_ptr.vmem [resolvable:$true] %s16_s13 }
   0x4   :  { %s344_s14 = scalar_lea.vmem %s17_s13, 512  ;;  %p349_p1 = scmp.lt.s32.totalorder %s17_s13, %s17_s13 }
   0x5   :  { %p345_p0 = scmp.ne.s32.totalorder %s17_s13, %s344_s14  ;;  %p350_p2 = scmp.lt.s32.totalorder %s344_s14, %s344_s14 }
   0x7   :  { %p351_p3 = por %p350_p2, %p349_p1 }
   0x9   :  { %p352_p4 = pnand %p351_p3, %p345_p0 }
   0xb   :  { %355 = shalt.err (!%p352_p4)
}
   0xc   :  { %s403_s15 = smov 128   ;;  %s404_s16 = smov 8  }
   0xd   :  { %22 = dma.hbm_to_vmem [thread:$0]  %s568_s0, 512, %s17_s13, [#allocation3], %s403_s15, %s403_s15, %s404_s16  }
   0xe   :  { %s405_s19 = smov [#allocation5]  }
   0xf   :  { %s28_s20 = sshll.u32 %s405_s19, 4  ;;  %s29_s20 = int_to_ptr.vmem [resolvable:$true] %s28_s20 }
  0x10   :  { %s364_s21 = scalar_lea.vmem %s29_s20, 3072  ;;  %p369_p6 = scmp.lt.s32.totalorder %s29_s20, %s29_s20 }
  0x11   :  { %p365_p5 = scmp.ne.s32.totalorder %s29_s20, %s364_s21  ;;  %p370_p7 = scmp.lt.s32.totalorder %s364_s21, %s364_s21 }
  0x13   :  { %p371_p8 = por %p370_p7, %p369_p6 }
  0x15   :  { %p372_p9 = pnand %p371_p8, %p365_p5 }
  0x17   :  { %375 = shalt.err (!%p372_p9)
}
  0x18   :  { %34 = dma.hbm_to_vmem [thread:$0]  %s569_s1, 3072, %s29_s20, [#allocation6], %s403_s15, %s403_s15, %s404_s16  }
  0x19   :  { %396 = dma.done.wait [#allocation3], 512  }
  0x1a   :  { %397 = vsyncadd [#allocation3], 4294966784 }
  0x1b   :  { %398 = dma.done.wait [#allocation6], 3072  }
  0x1c   :  { %399 = vsyncadd [#allocation6], 4294964224  ;;  %v76_v0 = vlaneseq  ;;  %v406_v1 = vmov 0.0   ;;  %v445_v3 = vld [vmem:[#allocation2] sm:$0xff]  ;;  %v447_v4 = vld [vmem:[#allocation2 + $0x8] sm:$0xff]  ;;  %s407_s0 = smov 64  }
  0x1d   :  { %131 = vmatprep.subr.mxu0 %v406_v1  ;;  %263 = vmatprep.subr.mxu1 %v406_v1  ;;  %v449_v5 = vld [vmem:[#allocation2 + $0x10] sm:$0xff]  ;;  %v452_v6 = vld [vmem:[#allocation2 + $0x18] sm:$0xff]  ;;  %v72_v7 = vrot.slane %v445_v3, 1  ;;  %v73_v8 = vrot.slane %v447_v4, 1  ;;  %v56_v15 = vld [vmem:[#allocation5 + $0x68] sm:$0xff]  ;;  %v83_v16 = vrot.slane %v445_v3, 2 }
  0x1e   :  { %v443_v2 = vshrl.u32 %v76_v0, 7  ;;  %v74_v9 = vrot.slane %v449_v5, 1  ;;  %v58_v10 = vld [vmem:[#allocation5 + $0x78] sm:$0xff]  ;;  %v57_v11 = vld [vmem:[#allocation5 + $0x70] sm:$0xff]  ;;  %v75_v12 = vrot.slane %v452_v6, 1  ;;  %v84_v17 = vrot.slane %v447_v4, 2 }
  0x1f   :  { %132 = vmatpush1.msra.mxu0 %v58_v10  ;;  %287 = vmatpush1.msra.mxu1 %v58_v10  ;;  %v85_v20 = vrot.slane %v449_v5, 2  ;;  %v86_v21 = vrot.slane %v452_v6, 2  ;;  %v55_v23 = vld [vmem:[#allocation5 + $0x60] sm:$0xff]  ;;  %v54_v27 = vld [vmem:[#allocation5 + $0x58] sm:$0xff]  ;;  %v53_v28 = vld [vmem:[#allocation5 + $0x50] sm:$0xff]  ;;  %vm108_vm2 = vcmask 523264  }
  0x20   :  { %vm78_vm0 = vcmp.lt.s32.totalorder %v443_v2, 7  ;;  %133 = vmatprep.subr.mxu0 %v406_v1  ;;  %264 = vmatprep.subr.mxu1 %v406_v1  ;;  %vm87_vm1 = vcmp.lt.s32.totalorder %v443_v2, 6  ;;  %v52_v29 = vld [vmem:[#allocation5 + $0x48] sm:$0xff]  ;;  %v51_v30 = vld [vmem:[#allocation5 + $0x40] sm:$0xff]  ;;  %v50_v31 = vld [vmem:[#allocation5 + $0x38] sm:$0xff] }
  0x21   :  { %v81_v13 = vsel %vm78_vm0, %v72_v7, %v73_v8  ;;  %v80_v14 = vsel %vm78_vm0, %v73_v8, %v74_v9  ;;  %v79_v18 = vsel %vm78_vm0, %v74_v9, %v75_v12  ;;  %v82_v19 = vsel %vm78_vm0, %v75_v12, %v72_v7  ;;  %134 = vmatpush1.msra.mxu0 %v57_v11  ;;  %v49_v32 = vld [vmem:[#allocation5 + $0x30] sm:$0xff]  ;;  %v48_v33 = vld [vmem:[#allocation5 + $0x28] sm:$0xff]  ;;  %v47_v34 = vld [vmem:[#allocation5 + $0x20] sm:$0xff] }
  0x22   :  { %288 = vmatpush1.msra.mxu1 %v57_v11  ;;  %v318_v22 = vpack.i.bf16 %v79_v18, %v81_v13  ;;  %135 = vmatprep.subr.mxu0 %v406_v1  ;;  %v481_v24 = vsel %vm87_vm1, %v84_v17, %v85_v20  ;;  %v489_v25 = vsel %vm87_vm1, %v86_v21, %v83_v16  ;;  %v46_v35 = vld [vmem:[#allocation5 + $0x18] sm:$0xff]  ;;  %v45_v36 = vld [vmem:[#allocation5 + $0x10] sm:$0xff]  ;;  %v44_v37 = vld [vmem:[#allocation5 + $0x8] sm:$0xff] }
  0x23   :  { %265 = vmatprep.subr.mxu1 %v406_v1  ;;  %136 = vmatpush1.msra.mxu0 %v56_v15  ;;  %v323_v26 = vpack.i.bf16 %v82_v19, %v80_v14  ;;  %v43_v38 = vld [vmem:[#allocation5] sm:$0xff]  ;;  %v66_v39 = vld [vmem:[#allocation5 + $0xb8] sm:$0xff]  ;;  %v65_v40 = vld [vmem:[#allocation5 + $0xb0] sm:$0xff]  ;;  %v90_v47 = vsel %vm87_vm1, %v83_v16, %v84_v17  ;;  %v88_v48 = vsel %vm87_vm1, %v85_v20, %v86_v21 }
  0x24   :  { %289 = vmatpush1.msra.mxu1 %v56_v15  ;;  %319 = vrot.lane.b32.xlu0 %v318_v22, %s407_s0  ;;  %v64_v41 = vld [vmem:[#allocation5 + $0xa8] sm:$0xff]  ;;  %v63_v42 = vld [vmem:[#allocation5 + $0xa0] sm:$0xff]  ;;  %v62_v43 = vld [vmem:[#allocation5 + $0x98] sm:$0xff] }
  0x25   :  { %137 = vmatprep.subr.mxu0 %v406_v1  ;;  %266 = vmatprep.subr.mxu1 %v406_v1  ;;  %v61_v44 = vld [vmem:[#allocation5 + $0x90] sm:$0xff]  ;;  %v60_v45 = vld [vmem:[#allocation5 + $0x88] sm:$0xff]  ;;  %v59_v46 = vld [vmem:[#allocation5 + $0x80] sm:$0xff] }
  0x26   :  { %138 = vmatpush1.msra.mxu0 %v55_v23  ;;  %290 = vmatpush1.msra.mxu1 %v55_v23  ;;  %v258_v59 = vld [vmem:[%s570_s2] ss:$0 sm:$0xff]  ;;  %s408_s2 = smov [#allocation7]  }
  0x27   :  { %139 = vmatprep.subr.mxu0 %v406_v1  ;;  %267 = vmatprep.subr.mxu1 %v406_v1  ;;  %s245_s25 = sshll.u32 %s408_s2, 4  ;;  %s246_s25 = int_to_ptr.vmem [resolvable:$true] %s245_s25 }
  0x28   :  { %140 = vmatpush1.msra.mxu0 %v54_v27  ;;  %324 = vrot.lane.b32.xlu0 %v323_v26, %s407_s0  ;;  %s376_s26 = scalar_lea.vmem %s246_s25, 512  ;;  %p381_p11 = scmp.lt.s32.totalorder %s246_s25, %s246_s25 }
  0x29   :  { %291 = vmatpush1.msra.mxu1 %v54_v27  ;;  %141 = vmatprep.subr.mxu0 %v406_v1  ;;  %p377_p10 = scmp.ne.s32.totalorder %s246_s25, %s376_s26  ;;  %p382_p12 = scmp.lt.s32.totalorder %s376_s26, %s376_s26 }
  0x2a   :  { %268 = vmatprep.subr.mxu1 %v406_v1  ;;  %142 = vmatpush1.msra.mxu0 %v53_v28 }
  0x2b   :  { %292 = vmatpush1.msra.mxu1 %v53_v28  ;;  %143 = vmatprep.subr.mxu0 %v406_v1  ;;  %p383_p13 = por %p382_p12, %p381_p11 }
  0x2c   :  { %269 = vmatprep.subr.mxu1 %v406_v1  ;;  %144 = vmatpush1.msra.mxu0 %v52_v29 }
  0x2d   :  { %293 = vmatpush1.msra.mxu1 %v52_v29  ;;  %145 = vmatprep.subr.mxu0 %v406_v1  ;;  %p384_p0 = pnand %p383_p13, %p377_p10 }
  0x2e   :  { %270 = vmatprep.subr.mxu1 %v406_v1  ;;  %146 = vmatpush1.msra.mxu0 %v51_v30 }
  0x2f   :  { %294 = vmatpush1.msra.mxu1 %v51_v30  ;;  %147 = vmatprep.subr.mxu0 %v406_v1 }
  0x30   :  { %271 = vmatprep.subr.mxu1 %v406_v1  ;;  %148 = vmatpush1.msra.mxu0 %v50_v31 }
  0x31   :  { %295 = vmatpush1.msra.mxu1 %v50_v31  ;;  %149 = vmatprep.subr.mxu0 %v406_v1 }
  0x32   :  { %272 = vmatprep.subr.mxu1 %v406_v1  ;;  %150 = vmatpush1.msra.mxu0 %v49_v32 }
  0x33   :  { %296 = vmatpush1.msra.mxu1 %v49_v32  ;;  %151 = vmatprep.subr.mxu0 %v406_v1 }
  0x34   :  { %273 = vmatprep.subr.mxu1 %v406_v1  ;;  %152 = vmatpush1.msra.mxu0 %v48_v33 }
  0x35   :  { %297 = vmatpush1.msra.mxu1 %v48_v33  ;;  %153 = vmatprep.subr.mxu0 %v406_v1 }
  0x36   :  { %274 = vmatprep.subr.mxu1 %v406_v1  ;;  %154 = vmatpush1.msra.mxu0 %v47_v34 }
  0x37   :  { %298 = vmatpush1.msra.mxu1 %v47_v34  ;;  %155 = vmatprep.subr.mxu0 %v406_v1 }
  0x38   :  { %275 = vmatprep.subr.mxu1 %v406_v1  ;;  %156 = vmatpush1.msra.mxu0 %v46_v35 }
  0x39   :  { %299 = vmatpush1.msra.mxu1 %v46_v35  ;;  %157 = vmatprep.subr.mxu0 %v406_v1 }
  0x3a   :  { %276 = vmatprep.subr.mxu1 %v406_v1  ;;  %158 = vmatpush1.msra.mxu0 %v45_v36 }
  0x3b   :  { %300 = vmatpush1.msra.mxu1 %v45_v36  ;;  %159 = vmatprep.subr.mxu0 %v406_v1 }
  0x3c   :  { %277 = vmatprep.subr.mxu1 %v406_v1  ;;  %160 = vmatpush1.msra.mxu0 %v44_v37 }
  0x3d   :  { %301 = vmatpush1.msra.mxu1 %v44_v37  ;;  %161 = vmatprep.subr.mxu0 %v406_v1 }
  0x3e   :  { %278 = vmatprep.subr.mxu1 %v406_v1  ;;  %162 = vmatpush1.msra.mxu0 %v43_v38 }
  0x3f   :  { %302 = vmatpush1.msra.mxu1 %v43_v38  ;;  %179 = vmatprep.subr.mxu0 %v406_v1 }
  0x40   :  { %279 = vmatprep.subr.mxu1 %v406_v1  ;;  %180 = vmatpush2.msra.mxu0 %v66_v39 }
  0x41   :  { %303 = vmatpush2.msra.mxu1 %v66_v39  ;;  %181 = vmatprep.subr.mxu0 %v406_v1 }
  0x42   :  { %280 = vmatprep.subr.mxu1 %v406_v1  ;;  %182 = vmatpush2.msra.mxu0 %v65_v40 }
  0x43   :  { %304 = vmatpush2.msra.mxu1 %v65_v40  ;;  %183 = vmatprep.subr.mxu0 %v406_v1 }
  0x44   :  { %281 = vmatprep.subr.mxu1 %v406_v1  ;;  %184 = vmatpush2.msra.mxu0 %v64_v41 }
  0x45   :  { %305 = vmatpush2.msra.mxu1 %v64_v41  ;;  %185 = vmatprep.subr.mxu0 %v406_v1 }
  0x46   :  { %282 = vmatprep.subr.mxu1 %v406_v1  ;;  %186 = vmatpush2.msra.mxu0 %v63_v42 }
  0x47   :  { %306 = vmatpush2.msra.mxu1 %v63_v42  ;;  %187 = vmatprep.subr.mxu0 %v406_v1 }
  0x48   :  { %283 = vmatprep.subr.mxu1 %v406_v1  ;;  %188 = vmatpush2.msra.mxu0 %v62_v43 }
  0x49   :  { %307 = vmatpush2.msra.mxu1 %v62_v43  ;;  %189 = vmatprep.subr.mxu0 %v406_v1 }
  0x4a   :  { %284 = vmatprep.subr.mxu1 %v406_v1  ;;  %190 = vmatpush2.msra.mxu0 %v61_v44 }
  0x4b   :  { %308 = vmatpush2.msra.mxu1 %v61_v44  ;;  %191 = vmatprep.subr.mxu0 %v406_v1 }
  0x4c   :  { %285 = vmatprep.subr.mxu1 %v406_v1  ;;  %192 = vmatpush2.msra.mxu0 %v60_v45 }
  0x4d   :  { %309 = vmatpush2.msra.mxu1 %v60_v45  ;;  %193 = vmatprep.subr.mxu0 %v406_v1 }
  0x4e   :  { %286 = vmatprep.subr.mxu1 %v406_v1  ;;  %194 = vmatpush2.msra.mxu0 %v59_v46 }
  0x4f   :  { %310 = vmatpush2.msra.mxu1 %v59_v46  ;;  %259 = vmatprep.mubr.msk.f32.mxu0 %vm108_vm2, %v90_v47 }
  0x50   :  { %261 = vmatprep.mubr.msk.f32.mxu1 %vm108_vm2, %v88_v48 }
  0x96   :  { %v320_v49 = vpop.permute.xlu0 %319 }
  0x97   :  { %v322_v50 = vunpack.i.h.bf16 %v320_v49  ;;  %v321_v51 = vunpack.i.l.bf16 %v320_v49 }
  0x99   :  { %v109_v52 = vsel %vm108_vm2, %v445_v3, %v321_v51  ;;  %v111_v53 = vsel %vm108_vm2, %v449_v5, %v322_v50 }
  0x9a   :  { %v325_v54 = vpop.permute.xlu0 %324  ;;  %196 = vmatmul.mubr.f32.vlgmr.msra.gmra.mxu0 %v109_v52  ;;  %206 = vmatmul.mubr.f32.vlgmr.msra.gmra.mxu1 %v111_v53 }
  0x9b   :  { %v327_v55 = vunpack.i.h.bf16 %v325_v54  ;;  %v326_v56 = vunpack.i.l.bf16 %v325_v54  ;;  %260 = vmatprep.mubr.msk.f32.mxu0 %vm108_vm2, %v481_v24  ;;  %262 = vmatprep.mubr.msk.f32.mxu1 %vm108_vm2, %v489_v25 }
  0x9d   :  { %v110_v57 = vsel %vm108_vm2, %v447_v4, %v326_v56  ;;  %v112_v58 = vsel %vm108_vm2, %v452_v6, %v327_v55 }
  0x9e   :  { %201 = vmatmul.mubr.f32.gmra.mxu0 %v110_v57  ;;  %211 = vmatmul.mubr.f32.gmra.mxu1 %v112_v58 }
 0x15a   :  { %v197_v60 = vpop.f32.mrf.mxu0  ;;  %v207_v61 = vpop.f32.mrf.mxu1 }
 0x15b   :  { %v198_v62 = vadd.f32 %v258_v59, %v197_v60  ;;  %v208_v63 = vadd.f32 %v258_v59, %v207_v61 }
 0x15c   :  { %v199_v0 = vpop.f32.mrf.mxu0  ;;  %v209_v1 = vpop.f32.mrf.mxu1 }
 0x15d   :  { %v216_v2 = vmul.f32 0.5, %v198_v62  ;;  %v218_v3 = vmul.f32 0.5, %v208_v63 }
 0x15e   :  { %v202_v5 = vpop.f32.mrf.mxu0  ;;  %v212_v7 = vpop.f32.mrf.mxu1 }
 0x15f   :  { %328 = vtanh.f32 %v216_v2  ;;  %v203_v4 = vadd.f32 %v258_v59, %v202_v5  ;;  %v213_v8 = vadd.f32 %v258_v59, %v212_v7 }
 0x160   :  { %330 = vtanh.f32 %v218_v3  ;;  %v204_v6 = vpop.f32.mrf.mxu0  ;;  %v214_v9 = vpop.f32.mrf.mxu1 }
 0x161   :  { %v217_v10 = vmul.f32 0.5, %v203_v4  ;;  %v219_v11 = vmul.f32 0.5, %v213_v8 }
 0x163   :  { %332 = vtanh.f32 %v217_v10 }
 0x164   :  { %334 = vtanh.f32 %v219_v11 }
 0x16c   :  { %v329_v12 = vpop.eup %328 }
 0x16d   :  { %v331_v13 = vpop.eup %330  ;;  %v224_v14 = vmul.f32 0.5, %v329_v12 }
 0x16e   :  { %v226_v15 = vmul.f32 0.5, %v331_v13 }
 0x16f   :  { %v228_v16 = vadd.f32 0.5, %v224_v14 }
 0x170   :  { %v333_v17 = vpop.eup %332  ;;  %v230_v18 = vadd.f32 0.5, %v226_v15 }
 0x171   :  { %v335_v19 = vpop.eup %334  ;;  %v232_v20 = vmul.f32 %v228_v16, %v198_v62  ;;  %v225_v21 = vmul.f32 0.5, %v333_v17 }
 0x172   :  { %v234_v22 = vmul.f32 %v230_v18, %v208_v63  ;;  %v227_v23 = vmul.f32 0.5, %v335_v19 }
 0x173   :  { %236 = vst [vmem:[#allocation7] sm:$0xff] %v232_v20  ;;  %v229_v24 = vadd.f32 0.5, %v225_v21 }
 0x174   :  { %238 = vst [vmem:[#allocation7 + $0x10] sm:$0xff] %v234_v22  ;;  %v231_v25 = vadd.f32 0.5, %v227_v23 }
 0x175   :  { %v233_v26 = vmul.f32 %v229_v24, %v203_v4 }
 0x176   :  { %v235_v27 = vmul.f32 %v231_v25, %v213_v8 }
 0x177   :  { %237 = vst [vmem:[#allocation7 + $0x8] sm:$0xff] %v233_v26 }
 0x178   :  { %239 = vst [vmem:[#allocation7 + $0x18] sm:$0xff] %v235_v27 }
 0x179   :  { %387 = shalt.err (!%p384_p0)
}
 0x17a   :  { %251 = dma.vmem_to_hbm [thread:$0]  %s246_s25, 512, %s571_s3, [#allocation4], %s403_s15, %s403_s15, %s404_s16  }
 0x17b   :  { %400 = dma.done.wait [#allocation4], 512  }
 0x17c   :  { %401 = vsyncadd [#allocation4], 4294966784 }
 0x17d   :  { %255 = vsyncpa [#allocation3], 1 }
 0x17e   :  { %256 = vsyncpa [#allocation6], 1 }
 0x17f   :  { %257 = vsyncpa [#allocation4], 1 }

</bundles_post_ra>
